<compile_context>
chip_gen: v7x
topology: tpu7x:2x2x1
jax: 0.10.0
libtpu: 0.0.40
codegen_flags: <defaults>
</compile_context>

<pallas_src>
import functools

import jax
import jax.numpy as jnp
from jax import lax
from jax.experimental import pallas as pl
from jax.experimental.pallas import tpu as pltpu

_EPS = 1e-5
_LANE = 128


def _round_up(v, m):
    return ((v + m - 1) // m) * m


@functools.lru_cache(maxsize=None)
def _vmem_limit_bytes():
    # Generation-aware scoped VMEM: ~75% of physical, clamped to [32, 96] MiB
    # (=> ~96 MiB on 128-MiB v5e/v6e parts, ~48 MiB on 64-MiB v7x).
    default = 64 * 1024 * 1024
    try:
        phys = int(pltpu.get_tpu_info().vmem_capacity_bytes)
    except Exception:
        return default
    return max(32 * 1024 * 1024, min(96 * 1024 * 1024, (phys * 3) // 4))


def _compiler_params(semantics):
    return pltpu.CompilerParams(dimension_semantics=semantics,
                                vmem_limit_bytes=_vmem_limit_bytes())


def _resident_spec(shape):
    """BlockSpec for a grid-invariant operand; single-buffered when supported."""
    index_map = lambda i: (0,) * len(shape)
    try:
        return pl.BlockSpec(shape, index_map, pipeline_mode=pl.Buffered(1))
    except Exception:  # older API without pipeline_mode / Buffered(1)
        return pl.BlockSpec(shape, index_map)


def _row_mask(tile_idx, tile_n, n_valid):
    # 1.0 for rows that belong to the real batch, 0.0 for padded rows.
    row = lax.broadcasted_iota(jnp.int32, (1, tile_n), 1) + tile_idx * tile_n
    return (row < n_valid).astype(jnp.float32)


def _elu(v):
    # torch.nn.ELU(alpha=1.0); expm1 for small-negative precision, clamp before
    # exp so there is no +inf intermediate on the positive branch.
    return jnp.where(v > 0.0, v, jnp.expm1(jnp.minimum(v, 0.0)))


def _mean_rstd(sum_v, ssq_v, n_valid):
    # Exact batch-wide BatchNorm1d statistics (biased variance).
    inv_n = 1.0 / float(n_valid)
    mean = sum_v * inv_n
    var = jnp.maximum(ssq_v * inv_n - mean * mean, 0.0)
    return mean, lax.rsqrt(var + _EPS)


def _bn_fold_inputs(sum_v, ssq_v, n_valid):
    """Tiny wrapper-side prep for the in-kernel BN fold."""
    mean, rstd = _mean_rstd(sum_v, ssq_v, n_valid)      # (1, F)
    rstd_col = rstd.reshape(-1, 1)                      # (F, 1) lane-broadcastable
    shift = mean * rstd                                 # (1, F): b' = b - shift @ W
    return rstd_col, shift


# --------------------------------------------------------------------------
# Kernels
# --------------------------------------------------------------------------
def _stats_kernel(n_valid, x_ref, sum_ref, ssq_ref):
    """Per-feature sum(x), sum(x^2) across batch tiles (column sums on MXU)."""
    i = pl.program_id(0)

    @pl.when(i == 0)
    def _():
        sum_ref[...] = jnp.zeros_like(sum_ref)
        ssq_ref[...] = jnp.zeros_like(ssq_ref)

    x = x_ref[...].astype(jnp.float32)
    mask = _row_mask(i, x.shape[0], n_valid)
    sum_ref[...] += jnp.dot(mask, x, preferred_element_type=jnp.float32)
    ssq_ref[...] += jnp.dot(mask, x * x, preferred_element_type=jnp.float32)


def _layer_kernel(n_valid, rstd_col_ref, shift_ref, x_ref, w_ref, b_ref,
                  h_ref, sum_ref, ssq_ref, wp_ref, bp_ref):
    """Folded-BN Linear (bf16 MXU, f32 acc) -> ELU, + stats for the next BN."""
    i = pl.program_id(0)

    @pl.when(i == 0)
    def _():
        # One-time BN fold into VMEM-resident W', b' (amortized over the grid).
        wp_ref[...] = w_ref[...] * rstd_col_ref[...].astype(jnp.bfloat16)
        bp_ref[...] = b_ref[...] - jnp.dot(
            shift_ref[...].astype(jnp.bfloat16), w_ref[...],
            preferred_element_type=jnp.float32)
        sum_ref[...] = jnp.zeros_like(sum_ref)
        ssq_ref[...] = jnp.zeros_like(ssq_ref)

    # Tile feeds the MXU directly from the bf16 activation ref.
    h = _elu(jnp.dot(x_ref[...], wp_ref[...],
                     preferred_element_type=jnp.float32) + bp_ref[...])
    h_ref[...] = h.astype(h_ref.dtype)          # bf16 writeback (half the vst bytes)

    mask = _row_mask(i, h.shape[0], n_valid)
    sum_ref[...] += jnp.dot(mask, h, preferred_element_type=jnp.float32)
    ssq_ref[...] += jnp.dot(mask, h * h, preferred_element_type=jnp.float32)


def _final_kernel(d_out, scale_ref, shift_ref, o_ref, out_ref):
    """BN(bn3) as scale/shift -> column-masked softmax (exact normalization)."""
    o = o_ref[...].astype(jnp.float32)
    logits = o * scale_ref[...] + shift_ref[...]

    col = lax.broadcasted_iota(jnp.int32, logits.shape, 1)
    logits = jnp.where(col < d_out, logits, -1e30)      # mask padded feature cols

    m = jnp.max(logits, axis=1, keepdims=True)
    e = jnp.exp(logits - m)
    denom = jnp.sum(e, axis=1, keepdims=True)
    out_ref[...] = (e / denom).astype(out_ref.dtype)    # exact division


# --------------------------------------------------------------------------
# pallas_call wrappers (one per pass)
# --------------------------------------------------------------------------
def _stats_pass(x_p, n_valid, tile):
    n_p, f = x_p.shape
    stat_spec = pl.BlockSpec((1, f), lambda i: (0, 0))
    return pl.pallas_call(
        functools.partial(_stats_kernel, n_valid),
        out_shape=(jax.ShapeDtypeStruct((1, f), jnp.float32),
                   jax.ShapeDtypeStruct((1, f), jnp.float32)),
        grid=(n_p // tile,),
        in_specs=[pl.BlockSpec((tile, f), lambda i: (i, 0))],
        out_specs=(stat_spec, stat_spec),
        compiler_params=_compiler_params(("arbitrary",)),
    )(x_p)


def _layer_pass(rstd_col, shift, x_p, w_p, b_p, n_valid, tile):
    n_p, f_in = x_p.shape
    f_out = w_p.shape[1]
    stat_spec = pl.BlockSpec((1, f_out), lambda i: (0, 0))
    return pl.pallas_call(
        functools.partial(_layer_kernel, n_valid),
        out_shape=(jax.ShapeDtypeStruct((n_p, f_out), jnp.bfloat16),
                   jax.ShapeDtypeStruct((1, f_out), jnp.float32),
                   jax.ShapeDtypeStruct((1, f_out), jnp.float32)),
        grid=(n_p // tile,),
        in_specs=[
            _resident_spec((f_in, 1)),                      # rstd column (f32)
            _resident_spec((1, f_in)),                      # mean*rstd row (f32)
            pl.BlockSpec((tile, f_in), lambda i: (i, 0)),   # activation tile (bf16)
            _resident_spec((f_in, f_out)),                  # weight (bf16, resident)
            _resident_spec((1, f_out)),                     # bias (f32, resident)
        ],
        out_specs=(pl.BlockSpec((tile, f_out), lambda i: (i, 0)),
                   stat_spec, stat_spec),
        scratch_shapes=[pltpu.VMEM((f_in, f_out), jnp.bfloat16),   # folded W'
                        pltpu.VMEM((1, f_out), jnp.float32)],      # folded b'
        # stats accumulate + scratch persists across the batch axis -> arbitrary
        compiler_params=_compiler_params(("arbitrary",)),
    )(rstd_col, shift, x_p, w_p, b_p)


def _softmax_pass(scale, shift, o_p, d_out, tile):
    n_p, f = o_p.shape
    return pl.pallas_call(
        functools.partial(_final_kernel, d_out),
        out_shape=jax.ShapeDtypeStruct((n_p, f), jnp.float32),
        grid=(n_p // tile,),
        in_specs=[_resident_spec((1, f)), _resident_spec((1, f)),
                  pl.BlockSpec((tile, f), lambda i: (i, 0))],
        out_specs=pl.BlockSpec((tile, f), lambda i: (i, 0)),
        # no cross-tile coupling -> shardable across v7x's two TensorCores
        compiler_params=_compiler_params(("parallel",)),
    )(scale, shift, o_p)


# --------------------------------------------------------------------------
# Public wrapper
# --------------------------------------------------------------------------
def three_layer_net(x, w1, b1, w2, b2, w3, b3, *, tile_n=512):
    """x: [N, D_in]; wK: [inK, outK]; bK: [1, outK].  Returns [N, D_out] f32."""
    n, d_in = x.shape
    h1_dim, h2_dim, d_out = w1.shape[1], w2.shape[1], w3.shape[1]

    # Lane-dense feature padding (multiples of 128).  Zero padding is exactly
    # preserved through the folded-BN Linear/ELU; softmax masks padded columns.
    d_in_p = _round_up(d_in, _LANE)
    h1_p = _round_up(h1_dim, _LANE)
    h2_p = _round_up(h2_dim, _LANE)
    d_out_p = _round_up(d_out, _LANE)

    # Batch tiling: split N as evenly as possible into ceil(N/tile_n) tiles
    # (rounded to 8-row sublane granularity) -> padding waste <= 7 rows/tile
    # instead of up to a full tile.
    tile_cap = max(8, _round_up(min(tile_n, n), 8))
    num_tiles = -(-n // tile_cap)
    tile = _round_up(-(-n // num_tiles), 8)
    n_p = tile * num_tiles

    pad2 = lambda a, r, c: jnp.pad(
        a, ((0, r - a.shape[0]), (0, c - a.shape[1])))

    # bf16 activations / weights in HBM (halves activation+weight DMA); f32 bias.
    x_p = pad2(x.astype(jnp.float32), n_p, d_in_p).astype(jnp.bfloat16)
    w1_p = pad2(w1.astype(jnp.float32), d_in_p, h1_p).astype(jnp.bfloat16)
    w2_p = pad2(w2.astype(jnp.float32), h1_p, h2_p).astype(jnp.bfloat16)
    w3_p = pad2(w3.astype(jnp.float32), h2_p, d_out_p).astype(jnp.bfloat16)
    b1_p = pad2(b1.reshape(1, -1).astype(jnp.float32), 1, h1_p)
    b2_p = pad2(b2.reshape(1, -1).astype(jnp.float32), 1, h2_p)
    b3_p = pad2(b3.reshape(1, -1).astype(jnp.float32), 1, d_out_p)

    s0, q0 = _stats_pass(x_p, n, tile)                               # bn0 stats
    r0, sh0 = _bn_fold_inputs(s0, q0, n)
    h1, s1, q1 = _layer_pass(r0, sh0, x_p, w1_p, b1_p, n, tile)      # bn0->lin1->elu
    r1, sh1 = _bn_fold_inputs(s1, q1, n)
    h2, s2, q2 = _layer_pass(r1, sh1, h1, w2_p, b2_p, n, tile)       # bn1->lin2->elu
    r2, sh2 = _bn_fold_inputs(s2, q2, n)
    o, s3, q3 = _layer_pass(r2, sh2, h2, w3_p, b3_p, n, tile)        # bn2->lin3->elu
    mean3, rstd3 = _mean_rstd(s3, q3, n)
    out_p = _softmax_pass(rstd3, -mean3 * rstd3, o, d_out, tile)     # bn3->softmax

    return out_p[:n, :d_out]


# --------------------------------------------------------------------------
# Reference + test
# --------------------------------------------------------------------------
def _ref_forward(x, w1, b1, w2, b2, w3, b3):
    # Pure-JAX f32 reference of the PyTorch module in training mode.
    def bn(v):
        m = jnp.mean(v, axis=0, keepdims=True)
        var = jnp.mean((v - m) ** 2, axis=0, keepdims=True)  # biased variance
        return (v - m) * lax.rsqrt(var + _EPS)

    def elu(v):
        return jnp.where(v > 0.0, v, jnp.expm1(jnp.minimum(v, 0.0)))

    h1 = elu(bn(x) @ w1 + b1)
    h2 = elu(bn(h1) @ w2 + b2)
    o = elu(bn(h2) @ w3 + b3)
    z = bn(o)
    e = jnp.exp(z - jnp.max(z, axis=1, keepdims=True))
    return e / jnp.sum(e, axis=1, keepdims=True)


def _init_linear(key, fan_in, fan_out):
    # Deterministic stand-in for PyTorch's default Linear init
    # (uniform in [-1/sqrt(fan_in), 1/sqrt(fan_in)]).
    kw, kb = jax.random.split(key)
    bound = 1.0 / jnp.sqrt(jnp.float32(fan_in))
    w = jax.random.uniform(kw, (fan_in, fan_out), jnp.float32, -bound, bound)
    b = jax.random.uniform(kb, (1, fan_out), jnp.float32, -bound, bound)
    return w, b


if __name__ == "__main__":
    # N=10 with tile_n=8 exercises multi-tile batch accumulation + padded-row
    # masking; H2=48 / D_out=16 exercise 128-lane feature padding + the
    # softmax column mask.
    N, D_in, H1, H2, D_out = 10, 32, 64, 48, 16

    key = jax.random.PRNGKey(0)
    kx, k1, k2, k3 = jax.random.split(key, 4)

    x = jax.random.normal(kx, (N, D_in), jnp.float32)
    w1, b1 = _init_linear(k1, D_in, H1)
    w2, b2 = _init_linear(k2, H1, H2)
    w3, b3 = _init_linear(k3, H2, D_out)

    pred = three_layer_net(x, w1, b1, w2, b2, w3, b3, tile_n=8)
    pred = jax.block_until_ready(pred)

    # Structural checks: shape, finite, valid probability rows.
    assert pred.shape == (N, D_out)
    assert bool(jnp.all(jnp.isfinite(pred)))
    assert bool(jnp.all(pred >= 0.0))
    row_sums = jnp.sum(pred, axis=1)
    assert bool(jnp.all(jnp.abs(row_sums - 1.0) < 1e-3))

    # Semantic check vs pure-JAX f32 reference (loose tol for bf16 activations).
    ref = _ref_forward(x, w1, b1, w2, b2, w3, b3)
    assert bool(jnp.max(jnp.abs(pred - ref)) < 5e-2)

    print("KERNEL_OK")
</pallas_src>

<mosaic_0001>
module attributes {stable_mosaic.version = 11 : i64} {
  func.func @_stats_kernel(%arg0: i32, %arg1: memref<8x128xbf16, #tpu.memory_space<vmem>>, %arg2: memref<1x128xf32, #tpu.memory_space<vmem>>, %arg3: memref<1x128xf32, #tpu.memory_space<vmem>>) attributes {dimension_semantics = [#tpu.dimension_semantics<arbitrary>], iteration_bounds = array<i64: 2>, scalar_prefetch = 0 : i64, scratch_operands = 0 : i64, tpu.core_type = #tpu.core_type<tc>, window_params = [{transform_indices = @transform_0, window_bounds = array<i64: 8, 128>}, {pipeline_mode = #tpu.pipeline_mode<synchronous>, transform_indices = @transform_1, window_bounds = array<i64: 1, 128>}, {pipeline_mode = #tpu.pipeline_mode<synchronous>, transform_indices = @transform_2, window_bounds = array<i64: 1, 128>}]} {
    %c0_i32 = arith.constant 0 : i32
    %0 = arith.cmpi eq, %arg0, %c0_i32 : i32
    %1 = arith.extui %0 : i1 to i32
    %c0_i32_0 = arith.constant 0 : i32
    %2 = arith.cmpi ne, %1, %c0_i32_0 : i32
    scf.if %2 {
      %cst_11 = arith.constant 0.000000e+00 : f32
      %22 = vector.broadcast %cst_11 : f32 to vector<1x128xf32>
      %c0_12 = arith.constant 0 : index
      %c0_13 = arith.constant 0 : index
      %23 = vector.load %arg2[%c0_12, %c0_13] : memref<1x128xf32, #tpu.memory_space<vmem>>, vector<1x128xf32>
      tpu.vector_store %arg2[%c0_12, %c0_13], %22 {strides = array<i32>} : memref<1x128xf32, #tpu.memory_space<vmem>>, vector<1x128xf32>,
      %cst_14 = arith.constant 0.000000e+00 : f32
      %24 = vector.broadcast %cst_14 : f32 to vector<1x128xf32>
      %c0_15 = arith.constant 0 : index
      %c0_16 = arith.constant 0 : index
      %25 = vector.load %arg3[%c0_15, %c0_16] : memref<1x128xf32, #tpu.memory_space<vmem>>, vector<1x128xf32>
      tpu.vector_store %arg3[%c0_15, %c0_16], %24 {strides = array<i32>} : memref<1x128xf32, #tpu.memory_space<vmem>>, vector<1x128xf32>,
    } else {
    }
    %c0 = arith.constant 0 : index
    %c0_1 = arith.constant 0 : index
    %3 = vector.load %arg1[%c0, %c0_1] : memref<8x128xbf16, #tpu.memory_space<vmem>>, vector<8x128xbf16>
    %4 = arith.extf %3 : vector<8x128xbf16> to vector<8x128xf32>
    %5 = tpu.iota {dimensions = array<i32: 1>} : vector<1x8xi32>
    %c8_i32 = arith.constant 8 : i32
    %6 = arith.muli %arg0, %c8_i32 : i32
    %7 = vector.broadcast %6 : i32 to vector<1x8xi32>
    %8 = arith.addi %5, %7 : vector<1x8xi32>
    %c10_i32 = arith.constant 10 : i32
    %9 = vector.broadcast %c10_i32 : i32 to vector<1x8xi32>
    %10 = arith.cmpi slt, %8, %9 : vector<1x8xi32>
    %11 = arith.extui %10 : vector<1x8xi1> to vector<1x8xi32>
    %12 = arith.sitofp %11 : vector<1x8xi32> to vector<1x8xf32>
    %c0_2 = arith.constant 0 : index
    %c0_3 = arith.constant 0 : index
    %13 = vector.load %arg2[%c0_2, %c0_3] : memref<1x128xf32, #tpu.memory_space<vmem>>, vector<1x128xf32>
    %cst = arith.constant dense<0.000000e+00> : vector<1x128xf32>
    %14 = tpu.matmul %12, %4, %cst {dimension_numbers = #tpu.dot_dimension_numbers<[1], [0], [0], [1], [0, 0, 1, 1], [], []>} : vector<1x8xf32>, vector<8x128xf32>, vector<1x128xf32> -> vector<1x128xf32>
    %15 = arith.addf %13, %14 : vector<1x128xf32>
    %c0_4 = arith.constant 0 : index
    %c0_5 = arith.constant 0 : index
    %16 = vector.load %arg2[%c0_4, %c0_5] : memref<1x128xf32, #tpu.memory_space<vmem>>, vector<1x128xf32>
    tpu.vector_store %arg2[%c0_4, %c0_5], %15 {strides = array<i32>} : memref<1x128xf32, #tpu.memory_space<vmem>>, vector<1x128xf32>,
    %c0_6 = arith.constant 0 : index
    %c0_7 = arith.constant 0 : index
    %17 = vector.load %arg3[%c0_6, %c0_7] : memref<1x128xf32, #tpu.memory_space<vmem>>, vector<1x128xf32>
    %18 = arith.mulf %4, %4 : vector<8x128xf32>
    %cst_8 = arith.constant dense<0.000000e+00> : vector<1x128xf32>
    %19 = tpu.matmul %12, %18, %cst_8 {dimension_numbers = #tpu.dot_dimension_numbers<[1], [0], [0], [1], [0, 0, 1, 1], [], []>} : vector<1x8xf32>, vector<8x128xf32>, vector<1x128xf32> -> vector<1x128xf32>
    %20 = arith.addf %17, %19 : vector<1x128xf32>
    %c0_9 = arith.constant 0 : index
    %c0_10 = arith.constant 0 : index
    %21 = vector.load %arg3[%c0_9, %c0_10] : memref<1x128xf32, #tpu.memory_space<vmem>>, vector<1x128xf32>
    tpu.vector_store %arg3[%c0_9, %c0_10], %20 {strides = array<i32>} : memref<1x128xf32, #tpu.memory_space<vmem>>, vector<1x128xf32>,
    return
  }
  func.func @transform_0(%arg0: i32) -> (i32, i32) {
    %c0_i32 = arith.constant 0 : i32
    %c0_i32_0 = arith.constant 0 : i32
    return %arg0, %c0_i32 : i32, i32
  }
  func.func @transform_1(%arg0: i32) -> (i32, i32) {
    %c0_i32 = arith.constant 0 : i32
    %c0_i32_0 = arith.constant 0 : i32
    %c0_i32_1 = arith.constant 0 : i32
    return %c0_i32, %c0_i32_0 : i32, i32
  }
  func.func @transform_2(%arg0: i32) -> (i32, i32) {
    %c0_i32 = arith.constant 0 : i32
    %c0_i32_0 = arith.constant 0 : i32
    %c0_i32_1 = arith.constant 0 : i32
    return %c0_i32, %c0_i32_0 : i32, i32
  }
}

</mosaic_0001>

<bundles_post_ra>
// kernel: tpu_custom_call.1
= control target key start
LH: loop header
LB: loop body
LE: loop exit
PB: predicated region body
PF: predicated region fallthrough
CT: control target
= control target key end

     0   :  { %8 = vsyncpa [#allocation3], 0  ;;  %s784_s0 = inlined_call_operand.hbm [shape: bf16[16,128], index: 0, kind: input, shape index: {}]   ;;  %s785_s1 = inlined_call_operand.hbm [shape: f32[1,128], index: 1, kind: output, shape index: {0}]   ;;  %s786_s2 = inlined_call_operand.hbm [shape: f32[1,128], index: 2, kind: output, shape index: {1}]  }
   0x1   :  { %10 = vsyncpa [#allocation3 + $0x1], 0 }
   0x2   :  { %11 = vsyncpa [#allocation4], 0 }
   0x3   :  { %12 = vsyncpa [#allocation7], 0  ;;  %s627_s9 = smov 0   ;;  %s629_s10 = smov 0  }
   0x4   :  { %s631_s11 = smov 0   ;;  %s633_s12 = smov 0  }
   0x5 LB: > { %s646_s13 = sadd.s32 4294967295, %s604_s12   ;;  %s649_s14 = sadd.s32 1, %s604_s12   ;;  %s604_s12 = sphi %s633_s12, %s794_s12   ;;  %s600_s11 = sphi %s631_s11, %s793_s11   ;;  %s596_s10 = sphi %s629_s10, %s792_s10   ;;  %s592_s9 = sphi %s627_s9, %s791_s9  }
   0x6   : > { %s22_s15 = ssub.s32 %s604_s12, %s649_s14  ;;  %s25_s16 = sadd.s32 1, %s600_s11 }
   0x7   : > { %p23_p0 = scmp.eq.s32.totalorder %s22_s15, 0  ;;  %p32_p1 = scmp.ne.s32.totalorder %s600_s11, %s596_s10 }
   0x8   : > { %p33_p2 = scmp.eq.s32.totalorder %s604_s12, 0  ;;  %p38_p3 = scmp.ne.s32.totalorder %s596_s10, %s592_s9 }
   0x9   : > { %s659_s17 = scalar_select %p23_p0, %s600_s11, %s25_s16  }
   0xa   : > { %p34_p4 = por %p33_p2, %p32_p1  ;;  %p39_p5 = scmp.eq.s32.totalorder %s646_s13, 0 }
   0xb   : > { %p438_p6 = scmp.lt.s32.totalorder %s604_s12, 2  ;;  %s104_s19 = sand.u32 1, %s600_s11  }
   0xc   : > { %p663_p7 = por %p39_p5, %p38_p3  ;;  %s395_s20 = sshll.u32 %s104_s19, 2 }
   0xd   : > { %s396_s21 = sshll.u32 %s604_s12, 6  ;;  %s108_s25 = scalar_lea.vmem [#allocation2], %s395_s20 }
   0xe   : > { %s672_s24 = scalar_lea.hbm %s784_s0, %s396_s21  ;;  %s115_s26 = sshll.u32 %s108_s25, 4  ;;  %s674_s26 = int_to_ptr.vmem [resolvable:$true] %s115_s26 }
   0xf   : > { %p676_p8 = pnand %p438_p6, %p34_p4  ;;  %s105_s28 = scalar_lea.sflag [#allocation3], %s104_s19 }
  0x10   : > { %s480_s29 = scalar_lea.hbm %s672_s24, 64  ;;  %s485_s4 = scalar_lea.hbm %s784_s0, 128 }
  0x11   : > { %p481_p11 = scmp.ne.s32.totalorder %s672_s24, %s480_s29  ;;  %p482_p12 = pneg %p676_p8 }
  0x12   : > { %p486_p1 = scmp.lt.u32.totalorder %s672_s24, %s784_s0  ;;  %p487_p2 = scmp.lt.u32.totalorder %s485_s4, %s480_s29 }
  0x13   : > { %p483_p13 = pnand %p482_p12, %p481_p11  ;;  %p489_p4 = scmp.lt.u32.totalorder %s480_s29, %s672_s24 }
  0x14   : > { %p488_p3 = por %p487_p2, %p486_p1 }
  0x15   : > { %p484_p0 = pneg %p483_p13 }
  0x16   : > { %p490_p5 = por %p489_p4, %p488_p3 }
  0x18   : > { %p491_p6 = pnand %p490_p5, %p484_p0 }
  0x1a   : > { %494 = shalt.err (!%p491_p6)
}
  0x1b   : > { %s495_s7 = scalar_lea.vmem %s674_s26, 64  ;;  %s606_s8 = smov [#allocation2]  }
  0x1c   : > { %p496_p11 = scmp.ne.s32.totalorder %s674_s26, %s495_s7  ;;  %s500_s9 = sshll.u32 %s606_s8, 4  ;;  %s501_s9 = int_to_ptr.vmem [resolvable:$false] %s500_s9 }
  0x1d   : > { %s502_s15 = scalar_lea.vmem %s501_s9, 128  ;;  %p503_p10 = scmp.lt.s32.totalorder %s674_s26, %s501_s9 }
  0x1e   : > { %p498_p13 = pnand %p496_p11, %p482_p12  ;;  %p504_p1 = scmp.lt.s32.totalorder %s502_s15, %s495_s7 }
  0x20   : > { %p499_p9 = pneg %p498_p13  ;;  %p505_p2 = por %p504_p1, %p503_p10 }
  0x22   : > { %p506_p3 = pnand %p505_p2, %p499_p9 }
  0x24   : > { %509 = shalt.err (!%p506_p3)
}
  0x25   : > { %437 = dma.hbm_to_vmem [thread:$0]  (!%p676_p8), %s672_s24, 64, %s674_s26, %s105_s28  }
  0x26   : > { %p789_p0 = scmp.lt.s32.totalorder %s604_s12, 3  ;;  %p790_p4 = scmp.ge.s32.totalorder %s604_s12, 1 }
  0x28   : > { %p121_p12 = pnand %p790_p4, %p789_p0 }
  0x29   : > { %s126_s16 = sand.u32 (!%p121_p12), 1, %s596_s10  }
  0x2a   : > { %124 = sbr.rel (%p121_p12) target bundleno = 319 (0x13f), region = 24  ;;  %s398_s19 = sshll.u32 (!%p121_p12), %s126_s16, 2 }
  0x2b   : > { %s127_s20 = scalar_lea.sflag (!%p121_p12), [#allocation3], %s126_s16  ;;  %s130_s21 = scalar_lea.vmem (!%p121_p12), [#allocation2], %s398_s19 }
  0x31   : > { %579 = dma.done.wait (%p663_p7), %s127_s20, 64  }
  0x32   : > { %581 = vsyncadd (%p663_p7), %s127_s20, 4294967232  ;;  %p399_p9 = scmp.ne.s32.totalorder %s646_s13, 0 }
  0x33   : > { %v607_v0 = vmov (!%p399_p9), 0.0  }
  0x34   : > { %149 = sbr.rel (%p399_p9) target bundleno = 59 (0x3b), region = 32  ;;  %150 = vst [vmem:[#allocation5] sm:$0x1] (!%p399_p9), %v607_v0  ;;  %151 = vst [vmem:[#allocation6] sm:$0x1] (!%p399_p9), %v607_v0 }
  0x3b PF: > { %v152_v1 = vld [vmem:[%s130_s21] sm:$0xf]  ;;  %v154_v2 = vlaneseq  ;;  %s400_s12 = sshll.u32 %s646_s13, 3  ;;  %v608_v3 = vmov 0.0   ;;  %vm609_vm0 = vmmov 0   ;;  %vm163_vm1 = vcmask 64512  }
  0x3c   : > { %414 = vmatprep.subr.mxu0 %v608_v3  ;;  %419 = vmatprep.subr.mxu1 %v608_v3  ;;  %v153_v4 = vunpack.c.l.bf16 %v152_v1  ;;  %v157_v5 = vstv %s400_s12  ;;  %v162_v10 = vld [vmem:[#allocation5] sm:$0x1]  ;;  %v239_v11 = vld [vmem:[#allocation6] sm:$0x1]  ;;  %s610_s18 = smov [#allocation5]   ;;  %s611_s23 = smov [#allocation6]  }
  0x3d   : > { %416 = vmatprep.mubr.msk.f32.mxu0 %vm609_vm0, %v608_v3  ;;  %421 = vmatprep.mubr.msk.f32.mxu1 %vm609_vm0, %v608_v3  ;;  %v155_v6 = vand.u32 127, %v154_v2  ;;  %s320_s22 = sshll.u32 %s610_s18, 4  ;;  %s331_s24 = sshll.u32 %s611_s23, 4  ;;  %s321_s22 = int_to_ptr.vmem [resolvable:$true] %s320_s22  ;;  %s719_s24 = int_to_ptr.vmem [resolvable:$true] %s331_s24 }
  0x3e   : > { %415 = vmatpush3.msra.mxu0 %v153_v4  ;;  %v240_v7 = vmul.f32 %v153_v4, %v153_v4  ;;  %p439_p7 = scmp.eq.s32.totalorder %s646_s13, 1  ;;  %s510_s25 = scalar_lea.vmem %s321_s22, 16 }
  0x3f   : > { %v158_v8 = vadd.s32 %v157_v5, %v155_v6  ;;  %p511_p8 = scmp.ne.s32.totalorder %s321_s22, %s510_s25  ;;  %s516_s26 = scalar_lea.vmem %s321_s22, 32 }
  0x40   : > { %420 = vmatpush3.msra.mxu1 %v240_v7  ;;  %p517_p6 = scmp.lt.s32.totalorder %s321_s22, %s321_s22  ;;  %p518_p11 = scmp.lt.s32.totalorder %s516_s26, %s510_s25 }
  0x41   : > { %vm159_vm2 = vcmp.lt.s32.totalorder %v158_v8, 10  ;;  %p512_p10 = pnand %p511_p8, %p439_p7 }
  0x42   : > { %v401_v9 = vsel %vm159_vm2, 1.0, %v608_v3  ;;  %p519_p13 = por %p518_p11, %p517_p6 }
  0x43   : > { %417 = vmatmul.mubr.msk.f32.vlgmr.msra.gmra.mrb[0].mxu0 %vm163_vm1, %v401_v9  ;;  %422 = vmatmul.mubr.msk.f32.vlgmr.msra.gmra.mrb[0].mxu1 %vm163_vm1, %v401_v9  ;;  %p513_p5 = pneg %p512_p10 }
  0x45   : > { %p520_p1 = pnand %p519_p13, %p513_p5 }
 0x116   : > { %v233_v12 = vpop.f32.mrb[0].mxu0  ;;  %v307_v13 = vpop.f32.mrb[0].mxu1 }
 0x117   : > { %v237_v14 = vadd.f32 %v233_v12, %v162_v10  ;;  %v311_v15 = vadd.f32 %v307_v13, %v239_v11  ;;  %v418_v16 = vpop.f32.mrb[1].mxu0  ;;  %v423_v17 = vpop.f32.mrb[1].mxu1 }
 0x119   : > { %238 = vst [vmem:[#allocation5] sm:$0x1] %v237_v14  ;;  %312 = vst [vmem:[#allocation6] sm:$0x1] %v311_v15 }
 0x11a   : > { %523 = shalt.err (!%p520_p1)
}
 0x11b   : > { %s524_s29 = scalar_lea.hbm %s785_s1, 16 }
 0x11c   : > { %p525_p2 = scmp.ne.s32.totalorder %s785_s1, %s524_s29  ;;  %p530_p4 = scmp.lt.u32.totalorder %s524_s29, %s785_s1 }
 0x11e   : > { %p526_p3 = pnand %p525_p2, %p439_p7 }
 0x120   : > { %p527_p0 = pneg %p526_p3 }
 0x122   : > { %p532_p12 = pnand %p530_p4, %p527_p0 }
 0x124   : > { %535 = shalt.err (!%p532_p12)
}
 0x125   : > { %427 = dma.vmem_to_hbm [thread:$0]  (%p439_p7), %s321_s22, 16, %s785_s1, [#allocation4]  }
 0x126   : > { %s536_s8 = scalar_lea.vmem %s719_s24, 16  ;;  %s542_s9 = scalar_lea.vmem %s719_s24, 32 }
 0x127   : > { %p537_p9 = scmp.ne.s32.totalorder %s719_s24, %s536_s8  ;;  %p543_p5 = scmp.lt.s32.totalorder %s719_s24, %s719_s24 }
 0x128   : > { %p544_p6 = scmp.lt.s32.totalorder %s542_s9, %s536_s8 }
 0x129   : > { %p538_p8 = pnand %p537_p9, %p439_p7 }
 0x12a   : > { %p545_p11 = por %p544_p6, %p543_p5 }
 0x12b   : > { %p539_p10 = pneg %p538_p8 }
 0x12d   : > { %p546_p13 = pnand %p545_p11, %p539_p10 }
 0x12f   : > { %549 = shalt.err (!%p546_p13)
}
 0x130   : > { %s550_s19 = scalar_lea.hbm %s786_s2, 16 }
 0x131   : > { %p551_p1 = scmp.ne.s32.totalorder %s786_s2, %s550_s19  ;;  %p556_p0 = scmp.lt.u32.totalorder %s550_s19, %s786_s2 }
 0x133   : > { %p552_p2 = pnand %p551_p1, %p439_p7 }
 0x135   : > { %p553_p3 = pneg %p552_p2 }
 0x137   : > { %p558_p4 = pnand %p556_p0, %p553_p3 }
 0x139   : > { %561 = shalt.err (!%p558_p4)
}
 0x13a   : > { %429 = dma.vmem_to_hbm [thread:$0]  (%p439_p7), %s719_s24, 16, %s786_s2, [#allocation7]  }
 0x13b   : > { %583 = dma.done.wait (%p439_p7), [#allocation4], 16  }
 0x13c   : > { %585 = vsyncadd (%p439_p7), [#allocation4], 4294967280 }
 0x13d   : > { %587 = dma.done.wait (%p439_p7), [#allocation7], 16  }
 0x13e   : > { %589 = vsyncadd (%p439_p7), [#allocation7], 4294967280 }
 0x13f PF: > { %p15_p12 = scmp.ge.s32.totalorder %s649_s14, 4   ;;  %s791_s9 = smov %s596_s10 }
 0x140   : > { %s792_s10 = smov %s600_s11  ;;  %s793_s11 = smov %s659_s17 }
 0x141   : > { %s794_s12 = smov %s649_s14  ;;  %17 = sbr.rel (!%p15_p12) target bundleno = 5 (0x5), region = 73 }
 0x148   :  { %348 = vsyncpa [#allocation3], 1 }
 0x149   :  { %350 = vsyncpa [#allocation3 + $0x1], 1 }
 0x14a   :  { %351 = vsyncpa [#allocation4], 1 }
 0x14b   :  { %353 = vsyncpa [#allocation4 + $0x1], 1 }
 0x14c   :  { %354 = vsyncpa [#allocation7], 1 }

</bundles_post_ra>
